<compile_context>
chip_gen: v6e
topology: v6e:2x2x1
jax: 0.10.0
libtpu: 0.0.40
codegen_flags: <defaults>
</compile_context>

<pallas_src>
import jax
import jax.numpy as jnp
from jax.experimental import pallas as pl
from jax.experimental.pallas import tpu as pltpu

# ----------------------------- hyper-parameters ------------------------------
B = 2              # batch
S = 8              # context sequence length
HIDDEN = 32        # hparams.hidden_size
NAV_EMBED = 16     # hparams.nav_embed_size
ASK_EMBED = 16     # hparams.ask_embed_size
IMG_FEAT = 64      # hparams.img_feature_size
BUDGET_EMBED = 8   # hparams.budget_embed_size
MAX_BUDGET = 10    # hparams.max_ask_budget
N_IN_NAV = 7       # agent_class.n_input_nav_actions()
N_OUT_NAV = 6      # agent_class.n_output_nav_actions()
N_IN_ASK = 5       # agent_class.n_input_ask_actions()
N_OUT_ASK = 4      # agent_class.n_output_ask_actions()
PADDING_IDX = 0    # nav_embedding padding_idx

LSTM_IN = NAV_EMBED + ASK_EMBED + IMG_FEAT                    # 96
XH_DIM = LSTM_IN + HIDDEN                                     # 128 == one full lane group
ASK_IN = HIDDEN * 2 + N_OUT_NAV + IMG_FEAT + BUDGET_EMBED     # 142

LANES = 128
B_PAD = 8          # batch padded to a full sublane group
NEG = -1e30        # finite "-inf" (avoids NaN for fully-masked rows)

# ---- dense weight slab layout (row offsets; all matmul operands are static views) ----
R_GATES = 0        # (128,128) lanes 0:128   [W_ih;W_hh], gates i,f,g,o in lane blocks
R_ASKA = 128       # (128, 32) lanes 0:32    w_ask1 rows for [h_tilde | h | feature]
R_OUT = 128        # ( 64, 32) lanes 32:64   linear_out stacked [W_weighted ; W_h]
R_ATTNIN = 192     # ( 32, 32) lanes 32:64   attention linear_in
R_ASKB = 224       # ( 16, 32) lanes 32:64   w_ask1 rows for [nav_sm(6)+pad | budget(8)]
R_NAV = 128        # ( 32,  6) lanes 64:70   nav predictor weight
R_ASK2 = 160       # ( 32,  4) lanes 64:68   second ask linear
RB_GATES = 256     # row: combined LSTM bias (b_ih+b_hh), lanes 0:128
RB_ASK1 = 257      # row: b_ask1, lanes 0:32
RB_NAV = 258       # row: b_nav,  lanes 0:6
RB_ASK2 = 259      # row: b_ask2, lanes 0:4
W_ROWS = 264

# ---- packed activation slab (16,128): two 8-row blocks --------------------------------
A_XH = 0           # rows 0:8  : [nav_emb 0:16 | ask_emb 16:32 | feature 32:96 | h0 96:128]
A_MISC = 8         # rows 8:16 : lane-packed misc block
L_C0 = 0           # lanes  0:32  c0
L_CTXM = 32        # lanes 32:40  ctx_mask (1.0 == masked)
L_NAVM = 40        # lanes 40:46  nav_logit_mask
L_ASKM = 48        # lanes 48:52  ask_logit_mask
L_BUDG = 56        # lanes 56:64  budget_embeds
ACT_ROWS = 16

# ---- packed output block (8,128): lane offsets -----------------------------------------
O_H, O_C, O_ALPHA, O_NAVL, O_NAVS, O_ASKL, O_ASKS = 0, 32, 64, 72, 80, 88, 96


def _softmax(x):
    m = jnp.max(x, axis=-1, keepdims=True)
    e = jnp.exp(x - m)
    return e / jnp.sum(e, axis=-1, keepdims=True)


# --------------------------------- kernel ------------------------------------
def decoder_kernel(w_ref, act_ref, ctx_ref, out_ref):
    f32 = jnp.float32
    neg = f32(NEG)

    act = act_ref[...]                                         # (16, 128)
    xh = act[A_XH:A_XH + B_PAD, :]                             # (8, 128) = [x | h0]
    misc = act[A_MISC:A_MISC + B_PAD, :]                       # (8, 128)
    c0 = misc[:, L_C0:L_C0 + HIDDEN]
    ctx_mask = misc[:, L_CTXM:L_CTXM + S]
    nav_mask = misc[:, L_NAVM:L_NAVM + N_OUT_NAV]
    ask_mask = misc[:, L_ASKM:L_ASKM + N_OUT_ASK]
    budget = misc[:, L_BUDG:L_BUDG + BUDGET_EMBED]
    feat = xh[:, NAV_EMBED + ASK_EMBED:NAV_EMBED + ASK_EMBED + IMG_FEAT]

    # ----- fused single-step LSTM cell: ONE (8,128)x(128,128) matmul for all 4 gates -----
    gates = (jnp.dot(xh, w_ref[R_GATES:R_GATES + XH_DIM, :],
                     preferred_element_type=f32)
             + w_ref[RB_GATES:RB_GATES + 1, :])                # (8, 128) pre-activations
    sig = jax.nn.sigmoid(gates)                                # one EUP push on full block
    i_g = sig[:, 0:HIDDEN]
    f_g = sig[:, HIDDEN:2 * HIDDEN]
    o_g = sig[:, 3 * HIDDEN:4 * HIDDEN]
    g_g = jnp.tanh(gates[:, 2 * HIDDEN:3 * HIDDEN])            # tanh only on g slice
    c_new = f_g * c0 + i_g * g_g
    h_new = o_g * jnp.tanh(c_new)          # == output_drop (dropout identity at eval)

    # ------------------------------- attention -------------------------------------
    ctx = ctx_ref[...]                                                   # (8, S, 32)
    target = jnp.dot(h_new, w_ref[R_ATTNIN:R_ATTNIN + HIDDEN, 32:64],
                     preferred_element_type=f32)                          # (8, 32)
    attn = jnp.sum(ctx * target[:, None, :], axis=2)                      # (8, S)
    attn = jnp.where(ctx_mask > 0.5, neg, attn)
    alpha = _softmax(attn)
    weighted = jnp.sum(alpha[:, :, None] * ctx, axis=1)                   # (8, 32)
    # fused linear_out: single (8,64)x(64,32) dot on [weighted | h_new]
    wh = jnp.concatenate([weighted, h_new], axis=-1)                       # (8, 64)
    h_tilde = jnp.tanh(jnp.dot(wh, w_ref[R_OUT:R_OUT + 2 * HIDDEN, 32:64],
                               preferred_element_type=f32))

    # ----------------------------- nav predictor ------------------------------------
    nav_logit = (jnp.dot(h_tilde, w_ref[R_NAV:R_NAV + HIDDEN, 64:64 + N_OUT_NAV],
                         preferred_element_type=f32)
                 + w_ref[RB_NAV:RB_NAV + 1, 0:N_OUT_NAV])
    nav_logit = jnp.where(nav_mask > 0.5, neg, nav_logit)
    nav_sm = _softmax(nav_logit)

    # ---- ask predictor: Linear -> ReLU -> Dropout(id) -> Linear; 2 fused dots -------
    ask_a = jnp.concatenate([h_tilde, h_new, feat], axis=-1)               # (8, 128)
    ask_b = jnp.concatenate([nav_sm, jnp.zeros((B_PAD, 2), f32), budget],
                            axis=-1)                                        # (8, 16)
    hid = (jnp.dot(ask_a, w_ref[R_ASKA:R_ASKA + XH_DIM, 0:HIDDEN],
                   preferred_element_type=f32)
           + jnp.dot(ask_b, w_ref[R_ASKB:R_ASKB + 16, 32:64],
                     preferred_element_type=f32)
           + w_ref[RB_ASK1:RB_ASK1 + 1, 0:HIDDEN])
    hid = jnp.maximum(hid, 0.0)

    ask_logit = (jnp.dot(hid, w_ref[R_ASK2:R_ASK2 + HIDDEN, 64:64 + N_OUT_ASK],
                         preferred_element_type=f32)
                 + w_ref[RB_ASK2:RB_ASK2 + 1, 0:N_OUT_ASK])
    ask_logit = jnp.where(ask_mask > 0.5, neg, ask_logit)
    ask_sm = _softmax(ask_logit)

    # --------- single lane-dense (8,128) output block -> one unmasked store ----------
    pad2 = jnp.zeros((B_PAD, 2), f32)
    pad4 = jnp.zeros((B_PAD, 4), f32)
    out_ref[...] = jnp.concatenate([
        h_new,                         # lanes  0:32
        c_new,                         # lanes 32:64
        alpha,                         # lanes 64:72
        nav_logit, pad2,               # lanes 72:80 (6 used)
        nav_sm, pad2,                  # lanes 80:88 (6 used)
        ask_logit, pad4,               # lanes 88:96 (4 used)
        ask_sm, pad4,                  # lanes 96:104 (4 used)
        jnp.zeros((B_PAD, LANES - 104), f32)], axis=-1)


# ------------------------------ parameters ------------------------------------
def make_params(key):
    def dense(k, shape, scale=0.1):
        return jax.random.normal(k, shape, dtype=jnp.float32) * scale

    ks = jax.random.split(key, 16)
    nav_emb = dense(ks[0], (N_IN_NAV, NAV_EMBED)).at[PADDING_IDX].set(0.0)
    raw = dict(
        nav_emb=nav_emb,
        ask_emb=dense(ks[1], (N_IN_ASK, ASK_EMBED)),
        budget_emb=dense(ks[2], (MAX_BUDGET, BUDGET_EMBED)),
        # LSTM weights stored (in, out); PyTorch gate order i, f, g, o along out
        w_ih=dense(ks[3], (LSTM_IN, 4 * HIDDEN)),
        b_ih=dense(ks[4], (1, 4 * HIDDEN)),
        w_hh=dense(ks[5], (HIDDEN, 4 * HIDDEN)),
        b_hh=dense(ks[6], (1, 4 * HIDDEN)),
        w_attn_in=dense(ks[7], (HIDDEN, HIDDEN)),
        w_attn_out=dense(ks[8], (2 * HIDDEN, HIDDEN)),
        w_nav=dense(ks[9], (HIDDEN, N_OUT_NAV)),
        b_nav=dense(ks[10], (1, N_OUT_NAV)),
        w_ask1=dense(ks[11], (ASK_IN, HIDDEN)),
        b_ask1=dense(ks[12], (1, HIDDEN)),
        w_ask2=dense(ks[13], (HIDDEN, N_OUT_ASK)),
        b_ask2=dense(ks[14], (1, N_OUT_ASK)),
    )

    # ---- dense (lane-packed) fused weight slab: (264, 128) f32 ----------------------
    slab = jnp.zeros((W_ROWS, LANES), jnp.float32)

    # fused LSTM gates: [W_ih; W_hh] stacked along rows, gates i,f,g,o along lanes
    w_xh = jnp.concatenate([raw['w_ih'], raw['w_hh']], axis=0)            # (128, 128)
    slab = slab.at[R_GATES:R_GATES + XH_DIM, 0:4 * HIDDEN].set(w_xh)
    slab = slab.at[RB_GATES, 0:4 * HIDDEN].set((raw['b_ih'] + raw['b_hh'])[0])
    # ask head part A: w_ask1 rows for [h_tilde | h(output_drop) | feature]
    slab = slab.at[R_ASKA:R_ASKA + XH_DIM, 0:HIDDEN].set(raw['w_ask1'][0:XH_DIM])
    # linear_out stacked: rows for weighted context then for h
    slab = slab.at[R_OUT:R_OUT + 2 * HIDDEN, 32:64].set(raw['w_attn_out'])
    # attention linear_in
    slab = slab.at[R_ATTNIN:R_ATTNIN + HIDDEN, 32:64].set(raw['w_attn_in'])
    # ask head part B: nav_sm rows (6, padded to 8) then budget rows (8)
    slab = slab.at[R_ASKB:R_ASKB + N_OUT_NAV, 32:64].set(
        raw['w_ask1'][XH_DIM:XH_DIM + N_OUT_NAV])
    slab = slab.at[R_ASKB + 8:R_ASKB + 8 + BUDGET_EMBED, 32:64].set(
        raw['w_ask1'][XH_DIM + N_OUT_NAV:ASK_IN])
    # nav predictor
    slab = slab.at[R_NAV:R_NAV + HIDDEN, 64:64 + N_OUT_NAV].set(raw['w_nav'])
    slab = slab.at[RB_NAV, 0:N_OUT_NAV].set(raw['b_nav'][0])
    # second ask linear
    slab = slab.at[R_ASK2:R_ASK2 + HIDDEN, 64:64 + N_OUT_ASK].set(raw['w_ask2'])
    slab = slab.at[RB_ASK2, 0:N_OUT_ASK].set(raw['b_ask2'][0])
    # first ask linear bias
    slab = slab.at[RB_ASK1, 0:HIDDEN].set(raw['b_ask1'][0])

    params = dict(nav_emb=raw['nav_emb'], ask_emb=raw['ask_emb'],
                  budget_emb=raw['budget_emb'], w_slab=slab)
    return params, raw


# ------------------------------ python wrapper --------------------------------
@jax.jit
def ask_attn_decoder_forward(params, nav_action, ask_action, feature, h, ctx, ctx_mask,
                             nav_logit_mask, ask_logit_mask, budget):
    """forward_tentative path of AskAttnDecoderClassifierLSTM (eval mode, no coverage)."""
    h0, c0 = h                                               # each (num_layers=1, B, H)
    b = nav_action.shape[0]
    assert b <= B_PAD
    f32 = jnp.float32

    # embedding lookups + packing glue (fused by XLA around the single Pallas call)
    # TODO(synk): could move these gathers in-kernel via PrefetchScalarGridSpec/SMEM.
    nav_embeds = params['nav_emb'][nav_action]
    ask_embeds = params['ask_emb'][ask_action]
    budget_embeds = params['budget_emb'][budget]

    xh = jnp.concatenate([nav_embeds, ask_embeds, feature, h0[0]], axis=1)   # (b, 128)
    xh_blk = jnp.zeros((B_PAD, LANES), f32).at[0:b, :].set(xh.astype(f32))

    misc = jnp.zeros((B_PAD, LANES), f32)
    misc = misc.at[0:b, L_C0:L_C0 + HIDDEN].set(c0[0].astype(f32))
    misc = misc.at[0:b, L_CTXM:L_CTXM + S].set(ctx_mask.astype(f32))
    misc = misc.at[0:b, L_NAVM:L_NAVM + N_OUT_NAV].set(nav_logit_mask.astype(f32))
    misc = misc.at[0:b, L_ASKM:L_ASKM + N_OUT_ASK].set(ask_logit_mask.astype(f32))
    misc = misc.at[0:b, L_BUDG:L_BUDG + BUDGET_EMBED].set(budget_embeds.astype(f32))

    acts = jnp.concatenate([xh_blk, misc], axis=0)                           # (16, 128)
    ctx_p = jnp.pad(ctx.astype(f32), ((0, B_PAD - b), (0, 0), (0, 0)))       # (8, S, H)

    out = pl.pallas_call(
        decoder_kernel,
        out_shape=jax.ShapeDtypeStruct((B_PAD, LANES), f32),
        in_specs=[pl.BlockSpec(memory_space=pltpu.MemorySpace.VMEM)] * 3,
        out_specs=pl.BlockSpec(memory_space=pltpu.MemorySpace.VMEM),
    )(params['w_slab'], acts, ctx_p)

    new_h = out[0:b, O_H:O_H + HIDDEN]
    new_c = out[0:b, O_C:O_C + HIDDEN]
    alpha = out[0:b, O_ALPHA:O_ALPHA + S]
    nav_logit = out[0:b, O_NAVL:O_NAVL + N_OUT_NAV]
    nav_sm = out[0:b, O_NAVS:O_NAVS + N_OUT_NAV]
    ask_logit = out[0:b, O_ASKL:O_ASKL + N_OUT_ASK]
    ask_sm = out[0:b, O_ASKS:O_ASKS + N_OUT_ASK]

    new_state = (new_h[None], new_c[None])        # mimic PyTorch LSTM (h_n, c_n)
    # TODO(synk): coverage (cov_rnn / cov_linear) path not instantiated (default VNLA
    # hparams have no coverage_size), so new_cov is None just like the PyTorch module.
    new_cov = None
    return new_state, alpha, nav_logit, nav_sm, ask_logit, ask_sm, new_cov


# --------------------- pure-JAX reference (for verification) -------------------
def reference_forward(raw, nav_action, ask_action, feature, h, ctx, ctx_mask,
                      nav_logit_mask, ask_logit_mask, budget):
    hp = jax.lax.Precision.HIGHEST
    h0, c0 = h
    x = jnp.concatenate([raw['nav_emb'][nav_action], raw['ask_emb'][ask_action], feature],
                        axis=1)
    gates = (jnp.dot(x, raw['w_ih'], precision=hp) + raw['b_ih']
             + jnp.dot(h0[0], raw['w_hh'], precision=hp) + raw['b_hh'])
    H = HIDDEN
    i = jax.nn.sigmoid(gates[:, 0:H])
    f = jax.nn.sigmoid(gates[:, H:2 * H])
    g = jnp.tanh(gates[:, 2 * H:3 * H])
    o = jax.nn.sigmoid(gates[:, 3 * H:4 * H])
    c_new = f * c0[0] + i * g
    h_new = o * jnp.tanh(c_new)
    target = jnp.dot(h_new, raw['w_attn_in'], precision=hp)
    attn = jnp.einsum('bsh,bh->bs', ctx, target, precision=hp)
    attn = jnp.where(ctx_mask, NEG, attn)
    alpha = jax.nn.softmax(attn, axis=-1)
    weighted = jnp.einsum('bs,bsh->bh', alpha, ctx, precision=hp)
    h_tilde = jnp.tanh(jnp.dot(jnp.concatenate([weighted, h_new], axis=1),
                               raw['w_attn_out'], precision=hp))
    nav_logit = jnp.dot(h_tilde, raw['w_nav'], precision=hp) + raw['b_nav']
    nav_logit = jnp.where(nav_logit_mask, NEG, nav_logit)
    nav_sm = jax.nn.softmax(nav_logit, axis=-1)
    budget_e = raw['budget_emb'][budget]
    ask_in = jnp.concatenate([h_tilde, h_new, feature, nav_sm, budget_e], axis=1)
    hid = jax.nn.relu(jnp.dot(ask_in, raw['w_ask1'], precision=hp) + raw['b_ask1'])
    ask_logit = jnp.dot(hid, raw['w_ask2'], precision=hp) + raw['b_ask2']
    ask_logit = jnp.where(ask_logit_mask, NEG, ask_logit)
    ask_sm = jax.nn.softmax(ask_logit, axis=-1)
    return h_new, c_new, alpha, nav_logit, nav_sm, ask_logit, ask_sm


# ----------------------------------- main --------------------------------------
if __name__ == "__main__":
    key = jax.random.PRNGKey(0)
    k_par, k_feat, k_ctx, k_h, k_c, k_nav, k_ask, k_bud = jax.random.split(key, 8)

    params, raw = make_params(k_par)

    nav_action = jax.random.randint(k_nav, (B,), 0, N_IN_NAV, dtype=jnp.int32)
    ask_action = jax.random.randint(k_ask, (B,), 0, N_IN_ASK, dtype=jnp.int32)
    budget = jax.random.randint(k_bud, (B,), 0, MAX_BUDGET, dtype=jnp.int32)
    feature = jax.random.normal(k_feat, (B, IMG_FEAT), dtype=jnp.float32)
    ctx = jax.random.normal(k_ctx, (B, S, HIDDEN), dtype=jnp.float32)
    h0 = jax.random.normal(k_h, (1, B, HIDDEN), dtype=jnp.float32)
    c0 = jax.random.normal(k_c, (1, B, HIDDEN), dtype=jnp.float32)

    # masks: True == masked (filled with a large negative before softmax)
    ctx_mask = jnp.zeros((B, S), dtype=jnp.bool_).at[0, S - 2:].set(True)
    nav_logit_mask = jnp.zeros((B, N_OUT_NAV), dtype=jnp.bool_).at[:, N_OUT_NAV - 1].set(True)
    ask_logit_mask = jnp.zeros((B, N_OUT_ASK), dtype=jnp.bool_).at[1, 0].set(True)

    out = ask_attn_decoder_forward(params, nav_action, ask_action, feature, (h0, c0),
                                   ctx, ctx_mask, nav_logit_mask, ask_logit_mask, budget)
    (new_h, new_c), alpha, nav_logit, nav_sm, ask_logit, ask_sm, new_cov = out
    jax.block_until_ready((new_h, new_c, alpha, nav_logit, nav_sm, ask_logit, ask_sm))

    # numerical sanity check against a pure-JAX reference of the same forward pass
    ref = reference_forward(raw, nav_action, ask_action, feature, (h0, c0), ctx, ctx_mask,
                            nav_logit_mask, ask_logit_mask, budget)
    got = (new_h[0], new_c[0], alpha, nav_logit, nav_sm, ask_logit, ask_sm)
    for g_arr, r_arr in zip(got, ref):
        assert g_arr.shape == r_arr.shape
        assert bool(jnp.all(jnp.isfinite(g_arr)))
        assert bool(jnp.allclose(g_arr, r_arr, rtol=1e-2, atol=2e-3))

    print("KERNEL_OK")
</pallas_src>

<mosaic_0001>
module attributes {stable_mosaic.version = 11 : i64} {
  func.func @decoder_kernel(%arg0: memref<264x128xf32, #tpu.memory_space<vmem>>, %arg1: memref<16x128xf32, #tpu.memory_space<vmem>>, %arg2: memref<8x8x32xf32, #tpu.memory_space<vmem>>, %arg3: memref<8x128xf32, #tpu.memory_space<vmem>>) attributes {dimension_semantics = [], scalar_prefetch = 0 : i64, scratch_operands = 0 : i64, tpu.core_type = #tpu.core_type<tc>} {
    %c0 = arith.constant 0 : index
    %c0_0 = arith.constant 0 : index
    %0 = vector.load %arg1[%c0, %c0_0] : memref<16x128xf32, #tpu.memory_space<vmem>>, vector<16x128xf32>
    %1 = vector.extract_strided_slice %0 {offsets = [0, 0], sizes = [8, 128], strides = [1, 1]} : vector<16x128xf32> to vector<8x128xf32>
    %2 = vector.extract_strided_slice %0 {offsets = [8, 0], sizes = [8, 128], strides = [1, 1]} : vector<16x128xf32> to vector<8x128xf32>
    %3 = vector.extract_strided_slice %2 {offsets = [0, 0], sizes = [8, 32], strides = [1, 1]} : vector<8x128xf32> to vector<8x32xf32>
    %4 = vector.extract_strided_slice %2 {offsets = [0, 32], sizes = [8, 8], strides = [1, 1]} : vector<8x128xf32> to vector<8x8xf32>
    %5 = vector.extract_strided_slice %2 {offsets = [0, 40], sizes = [8, 6], strides = [1, 1]} : vector<8x128xf32> to vector<8x6xf32>
    %6 = vector.extract_strided_slice %2 {offsets = [0, 48], sizes = [8, 4], strides = [1, 1]} : vector<8x128xf32> to vector<8x4xf32>
    %7 = vector.extract_strided_slice %2 {offsets = [0, 56], sizes = [8, 8], strides = [1, 1]} : vector<8x128xf32> to vector<8x8xf32>
    %8 = vector.extract_strided_slice %1 {offsets = [0, 32], sizes = [8, 64], strides = [1, 1]} : vector<8x128xf32> to vector<8x64xf32>
    %c0_1 = arith.constant 0 : index
    %c0_2 = arith.constant 0 : index
    %9 = vector.load %arg0[%c0_1, %c0_2] : memref<264x128xf32, #tpu.memory_space<vmem>>, vector<128x128xf32>
    %cst = arith.constant dense<0.000000e+00> : vector<8x128xf32>
    %10 = tpu.matmul %1, %9, %cst {dimension_numbers = #tpu.dot_dimension_numbers<[1], [0], [0], [1], [0, 0, 1, 1], [], []>} : vector<8x128xf32>, vector<128x128xf32>, vector<8x128xf32> -> vector<8x128xf32>
    %c256 = arith.constant 256 : index
    %c0_3 = arith.constant 0 : index
    %11 = vector.load %arg0[%c256, %c0_3] : memref<264x128xf32, #tpu.memory_space<vmem>>, vector<1x128xf32>
    %12 = vector.broadcast %11 : vector<1x128xf32> to vector<8x128xf32>
    %13 = arith.addf %10, %12 : vector<8x128xf32>
    %14 = arith.negf %13 : vector<8x128xf32>
    %15 = math.exp %14 : vector<8x128xf32>
    %cst_4 = arith.constant 1.000000e+00 : f32
    %16 = vector.broadcast %cst_4 : f32 to vector<8x128xf32>
    %17 = arith.addf %16, %15 : vector<8x128xf32>
    %18 = arith.divf %16, %17 : vector<8x128xf32>
    %19 = vector.extract_strided_slice %18 {offsets = [0, 0], sizes = [8, 32], strides = [1, 1]} : vector<8x128xf32> to vector<8x32xf32>
    %20 = vector.extract_strided_slice %18 {offsets = [0, 32], sizes = [8, 32], strides = [1, 1]} : vector<8x128xf32> to vector<8x32xf32>
    %21 = vector.extract_strided_slice %18 {offsets = [0, 96], sizes = [8, 32], strides = [1, 1]} : vector<8x128xf32> to vector<8x32xf32>
    %22 = vector.extract_strided_slice %13 {offsets = [0, 64], sizes = [8, 32], strides = [1, 1]} : vector<8x128xf32> to vector<8x32xf32>
    %23 = math.tanh %22 : vector<8x32xf32>
    %24 = arith.mulf %20, %3 : vector<8x32xf32>
    %25 = arith.mulf %19, %23 : vector<8x32xf32>
    %26 = arith.addf %24, %25 : vector<8x32xf32>
    %27 = math.tanh %26 : vector<8x32xf32>
    %28 = arith.mulf %21, %27 : vector<8x32xf32>
    %c0_5 = arith.constant 0 : index
    %c0_6 = arith.constant 0 : index
    %c0_7 = arith.constant 0 : index
    %29 = vector.load %arg2[%c0_5, %c0_6, %c0_7] : memref<8x8x32xf32, #tpu.memory_space<vmem>>, vector<8x8x32xf32>
    %c192 = arith.constant 192 : index
    %c32 = arith.constant 32 : index
    %30 = vector.load %arg0[%c192, %c32] : memref<264x128xf32, #tpu.memory_space<vmem>>, vector<32x32xf32>
    %cst_8 = arith.constant dense<0.000000e+00> : vector<8x32xf32>
    %31 = tpu.matmul %28, %30, %cst_8 {dimension_numbers = #tpu.dot_dimension_numbers<[1], [0], [0], [1], [0, 0, 1, 1], [], []>} : vector<8x32xf32>, vector<32x32xf32>, vector<8x32xf32> -> vector<8x32xf32>
    %32 = vector.shape_cast %31 : vector<8x32xf32> to vector<8x1x32xf32>
    %33 = vector.broadcast %32 : vector<8x1x32xf32> to vector<8x8x32xf32>
    %34 = arith.mulf %29, %33 : vector<8x8x32xf32>
    %cst_9 = arith.constant dense<0.000000e+00> : vector<8x8xf32>
    %35 = vector.multi_reduction <add>, %34, %cst_9 [2] : vector<8x8x32xf32> to vector<8x8xf32>
    %cst_10 = arith.constant 5.000000e-01 : f32
    %36 = vector.broadcast %cst_10 : f32 to vector<8x8xf32>
    %37 = arith.cmpf ogt, %4, %36 : vector<8x8xf32>
    %cst_11 = arith.constant -1.000000e+30 : f32
    %38 = vector.broadcast %cst_11 : f32 to vector<8x8xf32>
    %39 = arith.select %37, %38, %35 : vector<8x8xi1>, vector<8x8xf32>
    %cst_12 = arith.constant dense<0xFF800000> : vector<8xf32>
    %40 = vector.multi_reduction <maximumf>, %39, %cst_12 [1] : vector<8x8xf32> to vector<8xf32>
    %41 = vector.shape_cast %40 : vector<8xf32> to vector<8x1xf32>
    %42 = vector.broadcast %41 : vector<8x1xf32> to vector<8x8xf32>
    %43 = arith.subf %39, %42 : vector<8x8xf32>
    %44 = math.exp %43 : vector<8x8xf32>
    %cst_13 = arith.constant dense<0.000000e+00> : vector<8xf32>
    %45 = vector.multi_reduction <add>, %44, %cst_13 [1] : vector<8x8xf32> to vector<8xf32>
    %46 = vector.shape_cast %45 : vector<8xf32> to vector<8x1xf32>
    %47 = vector.broadcast %46 : vector<8x1xf32> to vector<8x8xf32>
    %48 = arith.divf %44, %47 : vector<8x8xf32>
    %49 = vector.shape_cast %48 : vector<8x8xf32> to vector<8x8x1xf32>
    %50 = vector.broadcast %49 : vector<8x8x1xf32> to vector<8x8x32xf32>
    %51 = arith.mulf %50, %29 : vector<8x8x32xf32>
    %cst_14 = arith.constant dense<0.000000e+00> : vector<8x32xf32>
    %52 = vector.multi_reduction <add>, %51, %cst_14 [1] : vector<8x8x32xf32> to vector<8x32xf32>
    %53 = tpu.concatenate %52, %28 in 1 : vector<8x32xf32>, vector<8x32xf32> -> vector<8x64xf32>
    %c128 = arith.constant 128 : index
    %c32_15 = arith.constant 32 : index
    %54 = vector.load %arg0[%c128, %c32_15] : memref<264x128xf32, #tpu.memory_space<vmem>>, vector<64x32xf32>
    %cst_16 = arith.constant dense<0.000000e+00> : vector<8x32xf32>
    %55 = tpu.matmul %53, %54, %cst_16 {dimension_numbers = #tpu.dot_dimension_numbers<[1], [0], [0], [1], [0, 0, 1, 1], [], []>} : vector<8x64xf32>, vector<64x32xf32>, vector<8x32xf32> -> vector<8x32xf32>
    %56 = math.tanh %55 : vector<8x32xf32>
    %c128_17 = arith.constant 128 : index
    %c64 = arith.constant 64 : index
    %57 = vector.load %arg0[%c128_17, %c64] : memref<264x128xf32, #tpu.memory_space<vmem>>, vector<32x6xf32>
    %cst_18 = arith.constant dense<0.000000e+00> : vector<8x6xf32>
    %58 = tpu.matmul %56, %57, %cst_18 {dimension_numbers = #tpu.dot_dimension_numbers<[1], [0], [0], [1], [0, 0, 1, 1], [], []>} : vector<8x32xf32>, vector<32x6xf32>, vector<8x6xf32> -> vector<8x6xf32>
    %c258 = arith.constant 258 : index
    %c0_19 = arith.constant 0 : index
    %59 = vector.load %arg0[%c258, %c0_19] : memref<264x128xf32, #tpu.memory_space<vmem>>, vector<1x6xf32>
    %60 = vector.broadcast %59 : vector<1x6xf32> to vector<8x6xf32>
    %61 = arith.addf %58, %60 : vector<8x6xf32>
    %cst_20 = arith.constant 5.000000e-01 : f32
    %62 = vector.broadcast %cst_20 : f32 to vector<8x6xf32>
    %63 = arith.cmpf ogt, %5, %62 : vector<8x6xf32>
    %cst_21 = arith.constant -1.000000e+30 : f32
    %64 = vector.broadcast %cst_21 : f32 to vector<8x6xf32>
    %65 = arith.select %63, %64, %61 : vector<8x6xi1>, vector<8x6xf32>
    %cst_22 = arith.constant dense<0xFF800000> : vector<8xf32>
    %66 = vector.multi_reduction <maximumf>, %65, %cst_22 [1] : vector<8x6xf32> to vector<8xf32>
    %67 = vector.shape_cast %66 : vector<8xf32> to vector<8x1xf32>
    %68 = vector.broadcast %67 : vector<8x1xf32> to vector<8x6xf32>
    %69 = arith.subf %65, %68 : vector<8x6xf32>
    %70 = math.exp %69 : vector<8x6xf32>
    %cst_23 = arith.constant dense<0.000000e+00> : vector<8xf32>
    %71 = vector.multi_reduction <add>, %70, %cst_23 [1] : vector<8x6xf32> to vector<8xf32>
    %72 = vector.shape_cast %71 : vector<8xf32> to vector<8x1xf32>
    %73 = vector.broadcast %72 : vector<8x1xf32> to vector<8x6xf32>
    %74 = arith.divf %70, %73 : vector<8x6xf32>
    %75 = tpu.concatenate %56, %28, %8 in 1 : vector<8x32xf32>, vector<8x32xf32>, vector<8x64xf32> -> vector<8x128xf32>
    %cst_24 = arith.constant 0.000000e+00 : f32
    %76 = vector.broadcast %cst_24 : f32 to vector<8x2xf32>
    %77 = tpu.concatenate %74, %76, %7 in 1 : vector<8x6xf32>, vector<8x2xf32>, vector<8x8xf32> -> vector<8x16xf32>
    %c128_25 = arith.constant 128 : index
    %c0_26 = arith.constant 0 : index
    %78 = vector.load %arg0[%c128_25, %c0_26] : memref<264x128xf32, #tpu.memory_space<vmem>>, vector<128x32xf32>
    %cst_27 = arith.constant dense<0.000000e+00> : vector<8x32xf32>
    %79 = tpu.matmul %75, %78, %cst_27 {dimension_numbers = #tpu.dot_dimension_numbers<[1], [0], [0], [1], [0, 0, 1, 1], [], []>} : vector<8x128xf32>, vector<128x32xf32>, vector<8x32xf32> -> vector<8x32xf32>
    %c224 = arith.constant 224 : index
    %c32_28 = arith.constant 32 : index
    %80 = vector.load %arg0[%c224, %c32_28] : memref<264x128xf32, #tpu.memory_space<vmem>>, vector<16x32xf32>
    %cst_29 = arith.constant dense<0.000000e+00> : vector<8x32xf32>
    %81 = tpu.matmul %77, %80, %cst_29 {dimension_numbers = #tpu.dot_dimension_numbers<[1], [0], [0], [1], [0, 0, 1, 1], [], []>} : vector<8x16xf32>, vector<16x32xf32>, vector<8x32xf32> -> vector<8x32xf32>
    %82 = arith.addf %79, %81 : vector<8x32xf32>
    %c257 = arith.constant 257 : index
    %c0_30 = arith.constant 0 : index
    %83 = vector.load %arg0[%c257, %c0_30] : memref<264x128xf32, #tpu.memory_space<vmem>>, vector<1x32xf32>
    %84 = vector.broadcast %83 : vector<1x32xf32> to vector<8x32xf32>
    %85 = arith.addf %82, %84 : vector<8x32xf32>
    %cst_31 = arith.constant 0.000000e+00 : f32
    %86 = vector.broadcast %cst_31 : f32 to vector<8x32xf32>
    %87 = arith.maximumf %85, %86 : vector<8x32xf32>
    %c160 = arith.constant 160 : index
    %c64_32 = arith.constant 64 : index
    %88 = vector.load %arg0[%c160, %c64_32] : memref<264x128xf32, #tpu.memory_space<vmem>>, vector<32x4xf32>
    %cst_33 = arith.constant dense<0.000000e+00> : vector<8x4xf32>
    %89 = tpu.matmul %87, %88, %cst_33 {dimension_numbers = #tpu.dot_dimension_numbers<[1], [0], [0], [1], [0, 0, 1, 1], [], []>} : vector<8x32xf32>, vector<32x4xf32>, vector<8x4xf32> -> vector<8x4xf32>
    %c259 = arith.constant 259 : index
    %c0_34 = arith.constant 0 : index
    %90 = vector.load %arg0[%c259, %c0_34] : memref<264x128xf32, #tpu.memory_space<vmem>>, vector<1x4xf32>
    %91 = vector.broadcast %90 : vector<1x4xf32> to vector<8x4xf32>
    %92 = arith.addf %89, %91 : vector<8x4xf32>
    %cst_35 = arith.constant 5.000000e-01 : f32
    %93 = vector.broadcast %cst_35 : f32 to vector<8x4xf32>
    %94 = arith.cmpf ogt, %6, %93 : vector<8x4xf32>
    %cst_36 = arith.constant -1.000000e+30 : f32
    %95 = vector.broadcast %cst_36 : f32 to vector<8x4xf32>
    %96 = arith.select %94, %95, %92 : vector<8x4xi1>, vector<8x4xf32>
    %cst_37 = arith.constant dense<0xFF800000> : vector<8xf32>
    %97 = vector.multi_reduction <maximumf>, %96, %cst_37 [1] : vector<8x4xf32> to vector<8xf32>
    %98 = vector.shape_cast %97 : vector<8xf32> to vector<8x1xf32>
    %99 = vector.broadcast %98 : vector<8x1xf32> to vector<8x4xf32>
    %100 = arith.subf %96, %99 : vector<8x4xf32>
    %101 = math.exp %100 : vector<8x4xf32>
    %cst_38 = arith.constant dense<0.000000e+00> : vector<8xf32>
    %102 = vector.multi_reduction <add>, %101, %cst_38 [1] : vector<8x4xf32> to vector<8xf32>
    %103 = vector.shape_cast %102 : vector<8xf32> to vector<8x1xf32>
    %104 = vector.broadcast %103 : vector<8x1xf32> to vector<8x4xf32>
    %105 = arith.divf %101, %104 : vector<8x4xf32>
    %cst_39 = arith.constant 0.000000e+00 : f32
    %106 = vector.broadcast %cst_39 : f32 to vector<8x2xf32>
    %cst_40 = arith.constant 0.000000e+00 : f32
    %107 = vector.broadcast %cst_40 : f32 to vector<8x4xf32>
    %cst_41 = arith.constant 0.000000e+00 : f32
    %108 = vector.broadcast %cst_41 : f32 to vector<8x24xf32>
    %109 = tpu.concatenate %28, %26, %48, %65, %106, %74, %106, %96, %107, %105, %107, %108 in 1 : vector<8x32xf32>, vector<8x32xf32>, vector<8x8xf32>, vector<8x6xf32>, vector<8x2xf32>, vector<8x6xf32>, vector<8x2xf32>, vector<8x4xf32>, vector<8x4xf32>, vector<8x4xf32>, vector<8x4xf32>, vector<8x24xf32> -> vector<8x128xf32>
    %c0_42 = arith.constant 0 : index
    %c0_43 = arith.constant 0 : index
    %110 = vector.load %arg3[%c0_42, %c0_43] : memref<8x128xf32, #tpu.memory_space<vmem>>, vector<8x128xf32>
    tpu.vector_store %arg3[%c0_42, %c0_43], %109 {strides = array<i32>} : memref<8x128xf32, #tpu.memory_space<vmem>>, vector<8x128xf32>,
    return
  }
}

</mosaic_0001>

<bundles_post_ra>
// kernel: ask_attn_decoder_forward.1
= control target key start
LH: loop header
LB: loop body
LE: loop exit
PB: predicated region body
PF: predicated region fallthrough
CT: control target
= control target key end

     0   :  { %v1400_v0 = vmov 0.0   ;;  %vm1401_vm0 = vmmov 0   ;;  %s1402_s21 = smov 64   ;;  %s1403_s24 = smov 32   ;;  %vm166_vm1 = vcmask 261120   ;;  %v244_v48 = vlaneseq  ;;  %s1881_s0 = inlined_call_operand.vmem [shape: f32[264,128], index: 0, kind: input, shape index: {}]   ;;  %s1882_s1 = inlined_call_operand.vmem [shape: f32[16,128], index: 1, kind: input, shape index: {}]   ;;  %s1883_s2 = inlined_call_operand.vmem [shape: f32[8,8,32], index: 2, kind: input, shape index: {}]   ;;  %s1884_s3 = inlined_call_operand.vmem [shape: f32[8,128], index: 3, kind: output, shape index: {}]  }
   0x1   :  { %1239 = vmatprep.subr.mxu0 %v1400_v0  ;;  %v31_v1 = vld [vmem:[%s1881_s0 + $0x78] sm:$0xff]  ;;  %v30_v2 = vld [vmem:[%s1881_s0 + $0x70] sm:$0xff]  ;;  %1271 = vmatprep.mubr.msk.f32.mxu0 %vm1401_vm0, %v1400_v0  ;;  %v29_v3 = vld [vmem:[%s1881_s0 + $0x68] sm:$0xff]  ;;  %v1405_v46 = vmov 1966171168   ;;  %vm405_vm2 = vcmask 1041409  }
   0x2   :  { %1240 = vmatpush3.msra.mxu0 %v31_v1  ;;  %1285 = vmatprep.subr.mxu1 %v1400_v0  ;;  %v28_v4 = vld [vmem:[%s1881_s0 + $0x60] sm:$0xff]  ;;  %v27_v5 = vld [vmem:[%s1881_s0 + $0x58] sm:$0xff]  ;;  %v26_v6 = vld [vmem:[%s1881_s0 + $0x50] sm:$0xff]  ;;  %v242_v47 = vunpack.c.l.s4 %v1405_v46  ;;  %v1566_v50 = vshrl.u32 %v244_v48, 7  ;;  %v371_v46 = vand.u32 127, %v244_v48  ;;  %vm407_vm3 = vcmask 1042434  }
   0x3   :  { %1241 = vmatprep.subr.mxu0 %v1400_v0  ;;  %1301 = vmatprep.mubr.msk.f32.mxu1 %vm1401_vm0, %v1400_v0  ;;  %v25_v7 = vld [vmem:[%s1881_s0 + $0x48] sm:$0xff]  ;;  %v24_v8 = vld [vmem:[%s1881_s0 + $0x40] sm:$0xff]  ;;  %v23_v9 = vld [vmem:[%s1881_s0 + $0x38] sm:$0xff]  ;;  %vm409_vm4 = vcmask 1043459   ;;  %vm411_vm5 = vcmask 1044484   ;;  %vm413_vm6 = vcmask 1045509  }
   0x4   :  { %1242 = vmatpush3.msra.mxu0 %v30_v2  ;;  %v22_v10 = vld [vmem:[%s1881_s0 + $0x30] sm:$0xff]  ;;  %v21_v11 = vld [vmem:[%s1881_s0 + $0x28] sm:$0xff]  ;;  %v20_v12 = vld [vmem:[%s1881_s0 + $0x20] sm:$0xff]  ;;  %v243_v49 = vunpack.c.0.s8 %v242_v47  ;;  %v1570_v56 = vsub.s32 0, %v1566_v50  ;;  %v372_v47 = vadd.s32 4294967264, %v371_v46  ;;  %vm415_vm7 = vcmask 1046534  }
   0x5   :  { %1243 = vmatprep.subr.mxu0 %v1400_v0  ;;  %v19_v13 = vld [vmem:[%s1881_s0 + $0x18] sm:$0xff]  ;;  %v18_v14 = vld [vmem:[%s1881_s0 + $0x10] sm:$0xff]  ;;  %v17_v15 = vld [vmem:[%s1881_s0 + $0x8] sm:$0xff]  ;;  %vm417_vm8 = vcmask 1047559   ;;  %vm421_vm10 = vcmask 326912   ;;  %vm432_vm11 = vcmask 64512  }
   0x6   :  { %1244 = vmatpush3.msra.mxu0 %v29_v3  ;;  %v16_v16 = vld [vmem:[%s1881_s0] sm:$0xff]  ;;  %v1515_v23 = vld [vmem:[%s1882_s1 + $0x8] sm:$0xff]  ;;  %v1523_v30 = vld [vmem:[%s1881_s0 + $0xd8] sm:$0xff]  ;;  %v246_v51 = vsub.s32 %v243_v49, %v1566_v50  ;;  %v464_v46 = vsub.s32 3, %v1566_v50  ;;  %vm626_vm12 = vcmask 523264   ;;  %s1406_s14 = smov 40  }
   0x7   :  { %1245 = vmatprep.subr.mxu0 %v1400_v0  ;;  %v1501_v17 = vld [vmem:[%s1882_s1] sm:$0xff]  ;;  %s1404_s1 = smov 96   ;;  %v1530_v31 = vld [vmem:[%s1881_s0 + $0xc8] sm:$0xff]  ;;  %v1542_v38 = vld [vmem:[%s1881_s0 + $0xd0] sm:$0xff]  ;;  %vm361_vm9 = vcmp.gt.f32.partialorder %v1515_v23, 0.5  ;;  %vm804_vm13 = vcmask 376128  }
   0x8   :  { %1246 = vmatpush3.msra.mxu0 %v28_v4  ;;  %v1168_v18 = vld [vmem:[%s1881_s0 + $0x100] ss:$0 sm:$0xff]  ;;  %v1581_v3 = vld [vmem:[%s1883_s2 + $0x8] sm:$0xff]  ;;  %s1407_s23 = smov 88   ;;  %vm815_vm14 = vcmask 48128   ;;  %s1408_s25 = smov 80  }
   0x9   :  { %1247 = vmatprep.subr.mxu0 %v1400_v0  ;;  %v1549_v39 = vld [vmem:[%s1881_s0 + $0xc0] sm:$0xff]  ;;  %vm860_vm15 = vcmask 130048   ;;  %s1409_s28 = smov 48  }
   0xa   :  { %1248 = vmatpush3.msra.mxu0 %v27_v5  ;;  %v1575_v63 = vld [vmem:[%s1883_s2] sm:$0xff] }
   0xb   :  { %1249 = vmatprep.subr.mxu0 %v1400_v0 }
   0xc   :  { %1250 = vmatpush3.msra.mxu0 %v26_v6 }
   0xd   :  { %1251 = vmatprep.subr.mxu0 %v1400_v0 }
   0xe   :  { %1252 = vmatpush3.msra.mxu0 %v25_v7 }
   0xf   :  { %1253 = vmatprep.subr.mxu0 %v1400_v0 }
  0x10   :  { %1254 = vmatpush3.msra.mxu0 %v24_v8 }
  0x11   :  { %1255 = vmatprep.subr.mxu0 %v1400_v0 }
  0x12   :  { %1256 = vmatpush3.msra.mxu0 %v23_v9  ;;  %v1589_v9 = vld [vmem:[%s1883_s2 + $0x18] sm:$0xff] }
  0x13   :  { %1257 = vmatprep.subr.mxu0 %v1400_v0 }
  0x14   :  { %1258 = vmatpush3.msra.mxu0 %v22_v10  ;;  %v1594_v10 = vld [vmem:[%s1883_s2 + $0x10] sm:$0xff] }
  0x15   :  { %1259 = vmatprep.subr.mxu0 %v1400_v0 }
  0x16   :  { %1260 = vmatpush3.msra.mxu0 %v21_v11 }
  0x17   :  { %1261 = vmatprep.subr.mxu0 %v1400_v0 }
  0x18   :  { %1262 = vmatpush3.msra.mxu0 %v20_v12 }
  0x19   :  { %1263 = vmatprep.subr.mxu0 %v1400_v0 }
  0x1a   :  { %1264 = vmatpush3.msra.mxu0 %v19_v13 }
  0x1b   :  { %1265 = vmatprep.subr.mxu0 %v1400_v0 }
  0x1c   :  { %1266 = vmatpush3.msra.mxu0 %v18_v14 }
  0x1d   :  { %1267 = vmatprep.subr.mxu0 %v1400_v0 }
  0x1e   :  { %1268 = vmatpush3.msra.mxu0 %v17_v15 }
  0x1f   :  { %1269 = vmatprep.subr.mxu0 %v1400_v0 }
  0x20   :  { %1270 = vmatpush3.msra.mxu0 %v16_v16 }
  0x21   :  { %1272 = vmatmul.mubr.f32.vlgmr.msra.gmra.mxu0 %v1501_v17  ;;  %1274 = vmatprep.subr.mxu0 %v1400_v0 }
  0x22   :  { %1282 = vmatprep.mubr.msk.f32.mxu0 %vm1401_vm0, %v1400_v0 }
  0xe1   :  { %v103_v19 = vpop.f32.mrf.mxu0 }
  0xe2   :  { %v104_v20 = vadd.f32 %v1168_v18, %v103_v19 }
  0xe3   :  { %v1273_v21 = vpop.f32.mrf.mxu0 }
  0xe4   :  { %1378 = vtanh.f32 %v104_v20  ;;  %v1169_v24 = vmul.f32 -1.442695, %v104_v20  ;;  %v1607_v21 = vld [vmem:[%s1883_s2 + $0x28] sm:$0xff] }
  0xe6   :  { %1380 = vpow2.f32 %v1169_v24  ;;  %v1612_v24 = vld [vmem:[%s1883_s2 + $0x20] sm:$0xff] }
  0xf1   :  { %v1379_v22 = vpop.eup %1378 }
  0xf2   :  { %120 = vrot.lane.b32.xlu0 %v1379_v22, %s1402_s21 }
  0xf3   :  { %v1381_v25 = vpop.eup %1380 }
  0xf4   :  { %v110_v26 = vadd.f32 1.0, %v1381_v25 }
  0xf6   :  { %115 = vrot.lane.b32.xlu0 %v1515_v23, %s1403_s24  ;;  %1382 = vrcp.f32 %v110_v26 }
  0xfa   :  { %160 = vrot.lane.b32.xlu0 %v1523_v30, %s1404_s1 }
  0xfe   :  { %156 = vrot.lane.b32.xlu0 %v1530_v31, %s1404_s1 }
 0x103   :  { %v1383_v27 = vpop.eup %1382 }
 0x164   :  { %v121_v28 = vpop.permute.xlu0 %120 }
 0x165   :  { %v123_v29 = vmul.f32 %v1383_v27, %v121_v28 }
 0x167   :  { %125 = vrot.lane.b32.xlu1 %v123_v29, %s1403_s24 }
 0x168   :  { %v116_v32 = vpop.permute.xlu0 %115 }
 0x169   :  { %v118_v33 = vmul.f32 %v1383_v27, %v116_v32  ;;  %v1622_v32 = vld [vmem:[%s1883_s2 + $0x38] sm:$0xff] }
 0x16c   :  { %v161_v36 = vpop.permute.xlu0 %160 }
 0x16d   :  { %1275 = vmatpush3.msra.mxu0 %v161_v36 }
 0x16e   :  { %1276 = vmatprep.subr.mxu0 %v1400_v0 }
 0x170   :  { %v157_v43 = vpop.permute.xlu0 %156 }
 0x1d9   :  { %v126_v34 = vpop.permute.xlu1 %125 }
 0x1da   :  { %v1534_v35 = vadd.f32 %v126_v34, %v118_v33  ;;  %v1628_v34 = vld [vmem:[%s1883_s2 + $0x30] sm:$0xff] }
 0x1dc   :  { %1384 = vtanh.f32 %v1534_v35 }
 0x1e9   :  { %v1385_v37 = vpop.eup %1384 }
 0x1ea   :  { %131 = vrot.lane.b32.xlu1 %v1385_v37, %s1402_s21 }
 0x1ee   :  { %158 = vrot.lane.b32.xlu1 %v1542_v38, %s1404_s1 }
 0x1f2   :  { %154 = vrot.lane.b32.xlu1 %v1549_v39, %s1404_s1 }
 0x25c   :  { %v132_v40 = vpop.permute.xlu1 %131 }
 0x25d   :  { %v1553_v41 = vmul.f32 %v1383_v27, %v132_v40 }
 0x25f   :  { %148 = vrot.lane.b32.xlu0 %v1553_v41, %s1403_s24 }
 0x260   :  { %v159_v42 = vpop.permute.xlu1 %158 }
 0x261   :  { %1277 = vmatpush3.msra.mxu0 %v159_v42 }
 0x262   :  { %1278 = vmatprep.subr.mxu0 %v1400_v0 }
 0x263   :  { %1279 = vmatpush3.msra.mxu0 %v157_v43 }
 0x264   :  { %1280 = vmatprep.subr.mxu0 %v1400_v0  ;;  %v155_v44 = vpop.permute.xlu1 %154 }
 0x265   :  { %1281 = vmatpush3.msra.mxu0 %v155_v44 }
 0x266   :  { %1315 = vmatprep.subr.mxu0 %v1400_v0 }
 0x2d1   :  { %v1560_v45 = vpop.permute.xlu0 %148 }
 0x2d2   :  { %1283 = vmatmul.mubr.msk.f32.vlgmr.msra.gmra.mxu0 %vm166_vm1, %v1560_v45 }
 0x2d3   :  { %1319 = vmatprep.mubr.msk.f32.mxu0 %vm1401_vm0, %v1400_v0 }
 0x392   :  { %v235_v52 = vpop.f32.mrf.mxu0 }
 0x393   :  { %v240_v53 = vcombine.high %v235_v52, %v235_v52  ;;  %v247_v54 = vrot.slane %v235_v52, %v246_v51 }
 0x394   :  { %v1284_v55 = vpop.f32.mrf.mxu0 }
 0x395   :  { %v254_v57 = vrot.slane %v240_v53, %v246_v51  ;;  %v255_v58 = vcombine.high %v247_v54, %v247_v54  ;;  %v263_v59 = vrot.slane %v247_v54, %v246_v51 }
 0x397   :  { %v256_v60 = vcombine.high %v254_v57, %v254_v57  ;;  %v277_v61 = vrot.slane %v255_v58, %v246_v51  ;;  %v285_v62 = vcombine.high %v263_v59, %v263_v59  ;;  %v270_v1 = vrot.slane %v254_v57, %v246_v51 }
 0x398   :  { %v292_v2 = vrot.slane %v263_v59, %v1570_v56 }
 0x399   :  { %v296_v4 = vrot.slane %v277_v61, %v1570_v56  ;;  %v287_v5 = vcombine.high %v277_v61, %v277_v61  ;;  %v300_v6 = vrot.slane %v285_v62, %v1570_v56  ;;  %v284_v7 = vrot.slane %v256_v60, %v246_v51 }
 0x39a   :  { %v329_v8 = vmul.f32 %v292_v2, %v1575_v63  ;;  %v308_v15 = vrot.slane %v270_v1, %v1570_v56  ;;  %v286_v22 = vcombine.high %v270_v1, %v270_v1  ;;  %v375_v51 = vsub.s32 %v372_v47, %v1566_v50 }
 0x39b   :  { %v330_v11 = vmul.f32 %v296_v4, %v1581_v3  ;;  %v304_v12 = vrot.slane %v287_v5, %v1570_v56  ;;  %v312_v14 = vrot.slane %v284_v7, %v1570_v56  ;;  %v288_v16 = vcombine.high %v284_v7, %v284_v7 }
 0x39c   :  { %v337_v13 = vsel %vm166_vm1, %v329_v8, 0.0  ;;  %v331_v20 = vmul.f32 %v300_v6, %v1594_v10  ;;  %v333_v29 = vmul.f32 %v308_v15, %v1612_v24  ;;  %v316_v33 = vrot.slane %v286_v22, %v1570_v56 }
 0x39d   :  { %338 = vadd.xlane.f32.xlu1 %v337_v13  ;;  %v340_v18 = vsel %vm166_vm1, %v330_v11, 0.0  ;;  %v332_v19 = vmul.f32 %v304_v12, %v1589_v9  ;;  %v334_v26 = vmul.f32 %v312_v14, %v1607_v21  ;;  %v320_v27 = vrot.slane %v288_v16, %v1570_v56 }
 0x39e   :  { %341 = vadd.xlane.f32.xlu0 %v340_v18  ;;  %v343_v28 = vsel %vm166_vm1, %v331_v20, 0.0  ;;  %v349_v40 = vsel %vm166_vm1, %v333_v29, 0.0  ;;  %v335_v42 = vmul.f32 %v316_v33, %v1628_v34  ;;  %v488_v47 = vsub.s32 6, %v1566_v50 }
 0x39f   :  { %v346_v25 = vsel %vm166_vm1, %v332_v19, 0.0  ;;  %v352_v36 = vsel %vm166_vm1, %v334_v26, 0.0  ;;  %v336_v37 = vmul.f32 %v320_v27, %v1622_v32 }
 0x3a0   :  { %v355_v44 = vsel %vm166_vm1, %v335_v42, 0.0  ;;  %v472_v42 = vsub.s32 4, %v1566_v50 }
 0x3a1   :  { %347 = vadd.xlane.f32.xlu1 %v346_v25  ;;  %v358_v43 = vsel %vm166_vm1, %v336_v37, 0.0 }
 0x3a2   :  { %344 = vadd.xlane.f32.xlu0 %v343_v28  ;;  %v448_v28 = vsub.s32 1, %v1566_v50 }
 0x3a5   :  { %353 = vadd.xlane.f32.xlu1 %v352_v36 }
 0x3a6   :  { %350 = vadd.xlane.f32.xlu0 %v349_v40  ;;  %v456_v40 = vsub.s32 2, %v1566_v50 }
 0x3a9   :  { %359 = vadd.xlane.f32.xlu1 %v358_v43 }
 0x3aa   :  { %356 = vadd.xlane.f32.xlu0 %v355_v44 }
 0x426   :  { %v339_v49 = vpop.xlane.xlu1 %338 }
 0x427   :  { %v342_v52 = vpop.xlane.xlu0 %341  ;;  %v376_v55 = vrot.slane %v339_v49, %v375_v51 }
 0x428   :  { %v380_v53 = vrot.slane %v342_v52, %v375_v51  ;;  %v1667_v52 = vld [vmem:[%s1881_s0 + $0xb8] sm:$0xff] }
 0x42a   :  { %v348_v54 = vpop.xlane.xlu1 %347  ;;  %v406_v59 = vsel %vm405_vm2, %v380_v53, %v376_v55  ;;  %v1676_v55 = vld [vmem:[%s1881_s0 + $0xa8] sm:$0xff] }
 0x42b   :  { %v345_v57 = vpop.xlane.xlu0 %344  ;;  %v388_v62 = vrot.slane %v348_v54, %v375_v51  ;;  %v496_v54 = vsub.s32 7, %v1566_v50 }
 0x42c   :  { %v384_v58 = vrot.slane %v345_v57, %v375_v51 }
 0x42e   :  { %v408_v60 = vsel %vm407_vm3, %v384_v58, %v406_v59  ;;  %v354_v61 = vpop.xlane.xlu1 %353  ;;  %v1684_v58 = vld [vmem:[%s1881_s0 + $0xb0] sm:$0xff]  ;;  %v1698_v59 = vld [vmem:[%s1881_s0 + $0xa0] sm:$0xff] }
 0x42f   :  { %v351_v48 = vpop.xlane.xlu0 %350  ;;  %v410_v2 = vsel %vm409_vm4, %v388_v62, %v408_v60  ;;  %v396_v6 = vrot.slane %v354_v61, %v375_v51  ;;  %v1703_v60 = vld [vmem:[%s1881_s0 + $0x88] sm:$0xff]  ;;  %v1712_v61 = vld [vmem:[%s1881_s0 + $0x90] sm:$0xff]  ;;  %v1717_v62 = vld [vmem:[%s1881_s0 + $0x80] sm:$0xff] }
 0x430   :  { %v392_v1 = vrot.slane %v351_v48, %v375_v51 }
 0x432   :  { %v412_v4 = vsel %vm411_vm5, %v392_v1, %v410_v2  ;;  %v360_v5 = vpop.xlane.xlu1 %359 }
 0x433   :  { %v357_v7 = vpop.xlane.xlu0 %356  ;;  %v404_v11 = vrot.slane %v360_v5, %v375_v51  ;;  %v414_v12 = vsel %vm413_vm6, %v396_v6, %v412_v4 }
 0x434   :  { %v400_v8 = vrot.slane %v357_v7, %v375_v51  ;;  %v480_v51 = vsub.s32 5, %v1566_v50  ;;  %v1689_v50 = vld [vmem:[%s1881_s0 + $0x98] sm:$0xff] }
 0x436   :  { %v416_v13 = vsel %vm415_vm7, %v400_v8, %v414_v12 }
 0x437   :  { %v418_v14 = vsel %vm417_vm8, %v404_v11, %v416_v13 }
 0x438   :  { %v420_v15 = vsel %vm361_vm9, -1e+30, %v418_v14 }
 0x439   :  { %v422_v16 = vsel %vm421_vm10, %v420_v15, -inf  ;;  %vm1159_vm10 = vcmask 818176  }
 0x43a   :  { %423 = vmax.xlane.f32.xlu0 %v422_v16 }
 0x4c3   :  { %v424_v18 = vpop.xlane.xlu0 %423 }
 0x4c4   :  { %v425_v19 = vsub.f32 %v420_v15, %v424_v18 }
 0x4c6   :  { %v426_v20 = vmul.f32 1.442695, %v425_v19 }
 0x4c8   :  { %1386 = vpow2.f32 %v426_v20 }
 0x4d5   :  { %v1387_v22 = vpop.eup %1386 }
 0x4d6   :  { %429 = vrot.lane.b32.xlu1 %v1387_v22, %s1404_s1 }
 0x548   :  { %v430_v25 = vpop.permute.xlu1 %429 }
 0x549   :  { %v433_v26 = vsel %vm432_vm11, %v430_v25, 0.0 }
 0x54a   :  { %434 = vadd.xlane.f32.xlu0 %v433_v26 }
 0x5d3   :  { %v435_v27 = vpop.xlane.xlu0 %434 }
 0x5d4   :  { %1388 = vrcp.f32 %v435_v27 }
 0x5e1   :  { %v1389_v29 = vpop.eup %1388 }
 0x5e2   :  { %v1650_v33 = vmul.f32 %v1389_v29, %v1387_v22 }
 0x5e4   :  { %v449_v36 = vrot.slane %v1650_v33, %v448_v28  ;;  %v441_v37 = vrot.slane %v1650_v33, %v1570_v56  ;;  %v457_v43 = vrot.slane %v1650_v33, %v456_v40  ;;  %v473_v44 = vrot.slane %v1650_v33, %v472_v42 }
 0x5e5   :  { %v465_v49 = vrot.slane %v1650_v33, %v464_v46  ;;  %v489_v56 = vrot.slane %v1650_v33, %v488_v47  ;;  %v481_v53 = vrot.slane %v1650_v33, %v480_v51  ;;  %v497_v57 = vrot.slane %v1650_v33, %v496_v54 }
 0x5e6   :  { %452 = vbcast.lane.b32.xlu1 %v449_v36, 288  ;;  %444 = vbcast.lane.b32.xlu0 %v441_v37, 288 }
 0x5ea   :  { %460 = vbcast.lane.b32.xlu1 %v457_v43, 288  ;;  %476 = vbcast.lane.b32.xlu0 %v473_v44, 288 }
 0x5ee   :  { %468 = vbcast.lane.b32.xlu1 %v465_v49, 288  ;;  %492 = vbcast.lane.b32.xlu0 %v489_v56, 288 }
 0x5f2   :  { %484 = vbcast.lane.b32.xlu1 %v481_v53, 288  ;;  %616 = vrot.lane.b32.xlu0 %v1667_v52, %s1404_s1 }
 0x5f6   :  { %500 = vbcast.lane.b32.xlu1 %v497_v57, 288  ;;  %612 = vrot.lane.b32.xlu0 %v1676_v55, %s1404_s1 }
 0x5fa   :  { %614 = vrot.lane.b32.xlu1 %v1684_v58, %s1404_s1  ;;  %608 = vrot.lane.b32.xlu0 %v1689_v50, %s1404_s1 }
 0x5fe   :  { %610 = vrot.lane.b32.xlu1 %v1698_v59, %s1404_s1  ;;  %604 = vrot.lane.b32.xlu0 %v1703_v60, %s1404_s1 }
 0x602   :  { %606 = vrot.lane.b32.xlu1 %v1712_v61, %s1404_s1  ;;  %602 = vrot.lane.b32.xlu0 %v1717_v62, %s1404_s1 }
 0x606   :  { %582 = vrot.lane.b32.xlu1 %v1553_v41, %s1402_s21  ;;  %718 = vrot.lane.b32.xlu0 %v1712_v61, %s1402_s21 }
 0x60a   :  { %720 = vrot.lane.b32.xlu1 %v1689_v50, %s1402_s21  ;;  %714 = vrot.lane.b32.xlu0 %v1717_v62, %s1402_s21 }
 0x60e   :  { %716 = vrot.lane.b32.xlu1 %v1703_v60, %s1402_s21 }
 0x658   :  { %v453_v48 = vpop.permute.xlu1 %452  ;;  %v445_v1 = vpop.permute.xlu0 %444 }
 0x659   :  { %v503_v2 = vmul.f32 %v453_v48, %v1581_v3  ;;  %v502_v4 = vmul.f32 %v445_v1, %v1575_v63 }
 0x65b   :  { %v517_v41 = vsel %vm166_vm1, %v503_v2, 0.0  ;;  %v510_v5 = vsel %vm166_vm1, %v502_v4, 0.0 }
 0x65c   :  { %v518_v6 = vrot.slane %v517_v41, 4  ;;  %v511_v7 = vrot.slane %v510_v5, 4  ;;  %v461_v8 = vpop.permute.xlu1 %460  ;;  %v477_v11 = vpop.permute.xlu0 %476 }
 0x65d   :  { %v504_v12 = vmul.f32 %v461_v8, %v1594_v10  ;;  %v506_v13 = vmul.f32 %v477_v11, %v1612_v24 }
 0x65e   :  { %v519_v14 = vadd.f32 %v518_v6, %v517_v41  ;;  %v512_v15 = vadd.f32 %v511_v7, %v510_v5 }
 0x65f   :  { %v524_v16 = vsel %vm166_vm1, %v504_v12, 0.0  ;;  %v538_v3 = vsel %vm166_vm1, %v506_v13, 0.0 }
 0x660   :  { %v520_v18 = vrot.slane %v519_v14, 2  ;;  %v513_v63 = vrot.slane %v512_v15, 2  ;;  %v525_v19 = vrot.slane %v524_v16, 4  ;;  %v539_v20 = vrot.slane %v538_v3, 4  ;;  %v469_v22 = vpop.permute.xlu1 %468  ;;  %v493_v25 = vpop.permute.xlu0 %492 }
 0x661   :  { %v505_v26 = vmul.f32 %v469_v22, %v1589_v9  ;;  %v508_v27 = vmul.f32 %v493_v25, %v1628_v34 }
 0x662   :  { %v521_v28 = vadd.f32 %v520_v18, %v519_v14  ;;  %v526_v10 = vadd.f32 %v525_v19, %v524_v16  ;;  %v540_v29 = vadd.f32 %v539_v20, %v538_v3  ;;  %v514_v24 = vadd.f32 %v513_v63, %v512_v15 }
 0x663   :  { %v531_v36 = vsel %vm166_vm1, %v505_v26, 0.0  ;;  %v552_v37 = vsel %vm166_vm1, %v508_v27, 0.0 }
 0x664   :  { %v527_v40 = vrot.slane %v526_v10, 2  ;;  %v485_v42 = vpop.permute.xlu1 %484  ;;  %v617_v43 = vpop.permute.xlu0 %616  ;;  %v541_v44 = vrot.slane %v540_v29, 2  ;;  %v532_v46 = vrot.slane %v531_v36, 4  ;;  %v553_v47 = vrot.slane %v552_v37, 4 }
 0x665   :  { %v507_v49 = vmul.f32 %v485_v42, %v1607_v21  ;;  %1286 = vmatpush3.msra.mxu1 %v617_v43  ;;  %v522_v9 = vrot.slane %v521_v28, 1  ;;  %v515_v34 = vrot.slane %v514_v24, 1 }
 0x666   :  { %v528_v56 = vadd.f32 %v527_v40, %v526_v10  ;;  %1287 = vmatprep.subr.mxu1 %v1400_v0  ;;  %v533_v51 = vadd.f32 %v532_v46, %v531_v36  ;;  %v554_v53 = vadd.f32 %v553_v47, %v552_v37  ;;  %v542_v4 = vadd.f32 %v541_v44, %v540_v29 }
 0x667   :  { %v545_v54 = vsel %vm166_vm1, %v507_v49, 0.0  ;;  %v523_v7 = vadd.f32 %v522_v9, %v521_v28  ;;  %v516_v8 = vadd.f32 %v515_v34, %v514_v24 }
 0x668   :  { %v529_v57 = vrot.slane %v528_v56, 1  ;;  %v546_v48 = vrot.slane %v545_v54, 4  ;;  %v501_v1 = vpop.permute.xlu1 %500  ;;  %v613_v2 = vpop.permute.xlu0 %612  ;;  %v534_v41 = vrot.slane %v533_v51, 2  ;;  %v555_v5 = vrot.slane %v554_v53, 2 }
 0x669   :  { %v509_v6 = vmul.f32 %v501_v1, %v1622_v32  ;;  %v543_v18 = vrot.slane %v542_v4, 1  ;;  %v574_v32 = vsel %vm405_vm2, %v523_v7, %v516_v8  ;;  %vm1117_vm2 = vcmask 31744  }
 0x66a   :  { %v547_v21 = vadd.f32 %v546_v48, %v545_v54  ;;  %v535_v11 = vadd.f32 %v534_v41, %v533_v51  ;;  %v530_v13 = vadd.f32 %v529_v57, %v528_v56  ;;  %v556_v19 = vadd.f32 %v555_v5, %v554_v53 }
 0x66b   :  { %v559_v12 = vsel %vm166_vm1, %v509_v6, 0.0  ;;  %v544_v24 = vadd.f32 %v543_v18, %v542_v4  ;;  %v1172_v6 = vld [vmem:[%s1881_s0 + $0x102] ss:$0 sm:$0xff] }
 0x66c   :  { %v548_v14 = vrot.slane %v547_v21, 2  ;;  %v560_v15 = vrot.slane %v559_v12, 4  ;;  %v615_v16 = vpop.permute.xlu1 %614  ;;  %v609_v3 = vpop.permute.xlu0 %608  ;;  %v536_v63 = vrot.slane %v535_v11, 1  ;;  %v575_v26 = vsel %vm407_vm3, %v530_v13, %v574_v32  ;;  %v849_v13 = vld [vmem:[%s1881_s0 + $0xe8] sm:$0xff] }
 0x66d   :  { %1288 = vmatpush3.msra.mxu1 %v615_v16  ;;  %v557_v37 = vrot.slane %v556_v19, 1  ;;  %vm1145_vm3 = vcmask 588800  }
 0x66e   :  { %v549_v20 = vadd.f32 %v548_v14, %v547_v21  ;;  %v561_v22 = vadd.f32 %v560_v15, %v559_v12  ;;  %1289 = vmatprep.subr.mxu1 %v1400_v0  ;;  %v537_v25 = vadd.f32 %v536_v63, %v535_v11  ;;  %v851_v11 = vld [vmem:[%s1881_s0 + $0xf8] sm:$0xff]  ;;  %v850_v12 = vld [vmem:[%s1881_s0 + $0xf0] sm:$0xff]  ;;  %v1796_v14 = vld [vmem:[%s1881_s0 + $0xe0] sm:$0xff] }
 0x66f   :  { %1290 = vmatpush3.msra.mxu1 %v613_v2  ;;  %v558_v49 = vadd.f32 %v557_v37, %v556_v19 }
 0x670   :  { %v550_v27 = vrot.slane %v549_v20, 1  ;;  %v562_v28 = vrot.slane %v561_v22, 2  ;;  %v611_v10 = vpop.permute.xlu1 %610  ;;  %1291 = vmatprep.subr.mxu1 %v1400_v0  ;;  %v605_v29 = vpop.permute.xlu0 %604  ;;  %v576_v36 = vsel %vm409_vm4, %v537_v25, %v575_v26  ;;  %vm1147_vm4 = vcmask 637952  }
 0x671   :  { %1292 = vmatpush3.msra.mxu1 %v611_v10  ;;  %v577_v43 = vsel %vm411_vm5, %v544_v24, %v576_v36  ;;  %v1175_v24 = vld [vmem:[%s1881_s0 + $0x101] ss:$0 sm:$0xff]  ;;  %vm1149_vm5 = vcmask 654336  }
 0x672   :  { %v551_v40 = vadd.f32 %v550_v27, %v549_v20  ;;  %v563_v42 = vadd.f32 %v562_v28, %v561_v22  ;;  %1293 = vmatprep.subr.mxu1 %v1400_v0 }
 0x673   :  { %1294 = vmatpush3.msra.mxu1 %v609_v3 }
 0x674   :  { %v564_v44 = vrot.slane %v563_v42, 1  ;;  %v607_v46 = vpop.permute.xlu1 %606  ;;  %1295 = vmatprep.subr.mxu1 %v1400_v0  ;;  %v578_v47 = vsel %vm413_vm6, %v551_v40, %v577_v43  ;;  %v603_v56 = vpop.permute.xlu0 %602  ;;  %v1176_v43 = vld [vmem:[%s1881_s0 + $0x103] ss:$0 sm:$0xff]  ;;  %vm1151_vm6 = vcmask 703488  }
 0x675   :  { %1296 = vmatpush3.msra.mxu1 %v607_v46  ;;  %v579_v34 = vsel %vm415_vm7, %v558_v49, %v578_v47  ;;  %vm1153_vm7 = vcmask 719872  }
 0x676   :  { %v565_v9 = vadd.f32 %v564_v44, %v563_v42  ;;  %1297 = vmatprep.subr.mxu1 %v1400_v0 }
 0x677   :  { %1298 = vmatpush3.msra.mxu1 %v605_v29 }
 0x678   :  { %v1761_v51 = vpop.permute.xlu1 %582  ;;  %v580_v53 = vsel %vm417_vm8, %v565_v9, %v579_v34  ;;  %1299 = vmatprep.subr.mxu1 %v1400_v0  ;;  %v719_v48 = vpop.permute.xlu0 %718  ;;  %vm1155_vm8 = vcmask 752640  }
 0x679   :  { %v585_v54 = vsel %vm166_vm1, %v580_v53, %v1761_v51  ;;  %1300 = vmatpush3.msra.mxu1 %v603_v56 }
 0x67a   :  { %1302 = vmatmul.mubr.msk.f32.vlgmr.msra.gmra.mxu1 %vm626_vm12, %v585_v54  ;;  %1304 = vmatprep.subr.mxu1 %v1400_v0 }
 0x67b   :  { %1312 = vmatprep.mubr.msk.f32.mxu1 %vm1401_vm0, %v1400_v0 }
 0x67c   :  { %v721_v57 = vpop.permute.xlu1 %720  ;;  %v715_v2 = vpop.permute.xlu0 %714 }
 0x67d   :  { %1305 = vmatpush3.msra.mxu1 %v721_v57 }
 0x67e   :  { %1306 = vmatprep.subr.mxu1 %v1400_v0 }
 0x67f   :  { %1307 = vmatpush3.msra.mxu1 %v719_v48 }
 0x680   :  { %v717_v1 = vpop.permute.xlu1 %716  ;;  %1308 = vmatprep.subr.mxu1 %v1400_v0 }
 0x681   :  { %1309 = vmatpush3.msra.mxu1 %v717_v1 }
 0x682   :  { %1310 = vmatprep.subr.mxu1 %v1400_v0 }
 0x683   :  { %1311 = vmatpush3.msra.mxu1 %v715_v2 }
 0x684   :  { %1322 = vmatprep.subr.mxu1 %v1400_v0 }
 0x73a   :  { %v696_v4 = vpop.f32.mrf.mxu1 }
 0x73b   :  { %1390 = vtanh.f32 %v696_v4  ;;  %v1143_v4 = vsel %vm166_vm1, %v1560_v45, %v1534_v35 }
 0x73c   :  { %v1303_v41 = vpop.f32.mrf.mxu1 }
 0x748   :  { %v1391_v5 = vpop.eup %1390 }
 0x749   :  { %1313 = vmatmul.mubr.msk.f32.vlgmr.msra.gmra.mxu1 %vm166_vm1, %v1391_v5 }
 0x74a   :  { %1354 = vmatprep.mubr.msk.f32.mxu1 %vm1401_vm0, %v1400_v0  ;;  %1323 = vmatpush3.msra.mxu1 %v851_v11 }
 0x74b   :  { %1324 = vmatprep.subr.mxu1 %v1400_v0 }
 0x74c   :  { %1325 = vmatpush3.msra.mxu1 %v850_v12 }
 0x74d   :  { %1326 = vmatprep.subr.mxu1 %v1400_v0 }
 0x74e   :  { %1327 = vmatpush3.msra.mxu1 %v849_v13 }
 0x74f   :  { %1328 = vmatprep.subr.mxu1 %v1400_v0 }
 0x750   :  { %1329 = vmatpush3.msra.mxu1 %v1796_v14 }
 0x751   :  { %1330 = vmatprep.subr.mxu1 %v1400_v0 }
 0x752   :  { %1331 = vmatpush3.msra.mxu1 %v1523_v30 }
 0x753   :  { %1332 = vmatprep.subr.mxu1 %v1400_v0 }
 0x754   :  { %1333 = vmatpush3.msra.mxu1 %v1542_v38 }
 0x755   :  { %1334 = vmatprep.subr.mxu1 %v1400_v0 }
 0x756   :  { %1335 = vmatpush3.msra.mxu1 %v1530_v31 }
 0x757   :  { %1336 = vmatprep.subr.mxu1 %v1400_v0 }
 0x758   :  { %1337 = vmatpush3.msra.mxu1 %v1549_v39 }
 0x759   :  { %1338 = vmatprep.subr.mxu1 %v1400_v0 }
 0x75a   :  { %1339 = vmatpush3.msra.mxu1 %v1667_v52 }
 0x75b   :  { %1340 = vmatprep.subr.mxu1 %v1400_v0 }
 0x75c   :  { %1341 = vmatpush3.msra.mxu1 %v1684_v58 }
 0x75d   :  { %1342 = vmatprep.subr.mxu1 %v1400_v0 }
 0x75e   :  { %1343 = vmatpush3.msra.mxu1 %v1676_v55 }
 0x75f   :  { %1344 = vmatprep.subr.mxu1 %v1400_v0 }
 0x760   :  { %1345 = vmatpush3.msra.mxu1 %v1698_v59 }
 0x761   :  { %1346 = vmatprep.subr.mxu1 %v1400_v0 }
 0x762   :  { %1347 = vmatpush3.msra.mxu1 %v1689_v50 }
 0x763   :  { %1348 = vmatprep.subr.mxu1 %v1400_v0 }
 0x764   :  { %1349 = vmatpush3.msra.mxu1 %v1712_v61 }
 0x765   :  { %1350 = vmatprep.subr.mxu1 %v1400_v0 }
 0x766   :  { %1351 = vmatpush3.msra.mxu1 %v1703_v60 }
 0x767   :  { %1352 = vmatprep.subr.mxu1 %v1400_v0 }
 0x768   :  { %1353 = vmatpush3.msra.mxu1 %v1717_v62  ;;  %v825_v62 = vsel %vm166_vm1, %v1391_v5, %v1761_v51 }
 0x809   :  { %v795_v21 = vpop.f32.mrf.mxu1 }
 0x80a   :  { %v796_v7 = vadd.f32 %v1172_v6, %v795_v21 }
 0x80b   :  { %v1314_v8 = vpop.f32.mrf.mxu1 }
 0x80c   :  { %800 = vrot.lane.b32.xlu1 %v796_v7, %s1406_s14 }
 0x87e   :  { %v801_v30 = vpop.permute.xlu1 %800 }
 0x87f   :  { %v1826_v31 = vsel %vm361_vm9, -1e+30, %v801_v30 }
 0x880   :  { %v805_v38 = vsel %vm804_vm13, %v1826_v31, -inf }
 0x881   :  { %806 = vmax.xlane.f32.xlu0 %v805_v38 }
 0x897   :  { %856 = vrot.lane.b32.xlu0 %v849_v13, %s1404_s1 }
 0x89b   :  { %822 = vrot.lane.b32.xlu0 %v1501_v17, %s1403_s24 }
 0x89f   :  { %831 = vrot.lane.b32.xlu0 %v1515_v23, %s1408_s25 }
 0x8a3   :  { %1022 = vrot.lane.b32.xlu0 %v1667_v52, %s1402_s21 }
 0x8a7   :  { %1018 = vrot.lane.b32.xlu0 %v1676_v55, %s1402_s21 }
 0x90a   :  { %v807_v39 = vpop.xlane.xlu0 %806 }
 0x90b   :  { %v808_v50 = vsub.f32 %v1826_v31, %v807_v39 }
 0x90d   :  { %v809_v60 = vmul.f32 1.442695, %v808_v50 }
 0x90e   :  { %v857_v61 = vpop.permute.xlu0 %856 }
 0x90f   :  { %1392 = vpow2.f32 %v809_v60  ;;  %1316 = vmatpush3.msra.mxu0 %v857_v61 }
 0x910   :  { %1317 = vmatprep.subr.mxu0 %v1400_v0 }
 0x912   :  { %v823_v15 = vpop.permute.xlu0 %822 }
 0x913   :  { %v826_v16 = vsel %vm626_vm12, %v825_v62, %v823_v15 }
 0x914   :  { %1355 = vmatmul.mubr.f32.vlgmr.msra.gmra.mxu1 %v826_v16 }
 0x916   :  { %v832_v25 = vpop.permute.xlu0 %831 }
 0x91a   :  { %v1023_v27 = vpop.permute.xlu0 %1022 }
 0x91c   :  { %v1393_v3 = vpop.eup %1392 }
 0x91d   :  { %812 = vrot.lane.b32.xlu1 %v1393_v3, %s1407_s23 }
 0x98f   :  { %v813_v17 = vpop.permute.xlu1 %812 }
 0x990   :  { %v816_v18 = vsel %vm815_vm14, %v813_v17, 0.0 }
 0x991   :  { %817 = vadd.xlane.f32.xlu1 %v816_v18 }
 0x9d4   :  { %v1000_v63 = vpop.f32.mrf.mxu1 }
 0x9d6   :  { %v1356_v19 = vpop.f32.mrf.mxu1 }
 0xa1a   :  { %v818_v20 = vpop.xlane.xlu1 %817 }
 0xa1b   :  { %1394 = vrcp.f32 %v818_v20 }
 0xa28   :  { %v1395_v22 = vpop.eup %1394 }
 0xa29   :  { %v820_v32 = vmul.f32 %v1395_v22, %v1393_v3 }
 0xa2b   :  { %828 = vrot.lane.b32.xlu1 %v820_v32, %s1407_s23 }
 0xa2f   :  { %854 = vrot.lane.b32.xlu1 %v1796_v14, %s1404_s1 }
 0xa33   :  { %1020 = vrot.lane.b32.xlu1 %v1684_v58, %s1402_s21 }
 0xa37   :  { %1016 = vrot.lane.b32.xlu1 %v1698_v59, %s1402_s21  ;;  %v1019_v59 = vpop.permute.xlu0 %1018 }
 0xa9d   :  { %v829_v52 = vpop.permute.xlu1 %828 }
 0xa9e   :  { %v834_v55 = vsel %vm815_vm14, %v829_v52, 0.0 }
 0xa9f   :  { %v835_v28 = vsel %vm432_vm11, %v834_v55, %v832_v25  ;;  %vm1161_vm11 = vcmask 850944  }
 0xaa1   :  { %v855_v26 = vpop.permute.xlu1 %854 }
 0xaa2   :  { %1318 = vmatpush3.msra.mxu0 %v855_v26 }
 0xaa3   :  { %1320 = vmatmul.mubr.msk.f32.vlgmr.msra.gmra.mxu0 %vm860_vm15, %v835_v28  ;;  %1357 = vmatprep.subr.mxu0 %v1400_v0 }
 0xaa4   :  { %1358 = vmatpush3.msra.mxu0 %v1023_v27  ;;  %1365 = vmatprep.mubr.msk.f32.mxu0 %vm1401_vm0, %v1400_v0  ;;  %vm1106_vm0 = vcmask 425344  }
 0xaa5   :  { %1359 = vmatprep.subr.mxu0 %v1400_v0  ;;  %v1021_v58 = vpop.permute.xlu1 %1020 }
 0xaa6   :  { %1360 = vmatpush3.msra.mxu0 %v1021_v58 }
 0xaa7   :  { %1361 = vmatprep.subr.mxu0 %v1400_v0 }
 0xaa8   :  { %1362 = vmatpush3.msra.mxu0 %v1019_v59 }
 0xaa9   :  { %v1017_v10 = vpop.permute.xlu1 %1016  ;;  %1363 = vmatprep.subr.mxu0 %v1400_v0 }
 0xaaa   :  { %1364 = vmatpush3.msra.mxu0 %v1017_v10 }
 0xb63   :  { %v930_v29 = vpop.f32.mrf.mxu0 }
 0xb64   :  { %v1001_v36 = vadd.f32 %v1000_v63, %v930_v29 }
 0xb65   :  { %v1321_v37 = vpop.f32.mrf.mxu0 }
 0xb66   :  { %v1009_v40 = vadd.f32 %v1175_v24, %v1001_v36 }
 0xb68   :  { %v1010_v42 = vmax.f32 %v1009_v40, 0.0 }
 0xb6a   :  { %1366 = vmatmul.mubr.msk.f32.vlgmr.msra.gmra.mxu0 %vm166_vm1, %v1010_v42 }
 0xc2a   :  { %v1097_v44 = vpop.f32.mrf.mxu0 }
 0xc2b   :  { %v1098_v46 = vadd.f32 %v1176_v43, %v1097_v44 }
 0xc2c   :  { %v1367_v47 = vpop.f32.mrf.mxu0 }
 0xc2d   :  { %1102 = vrot.lane.b32.xlu0 %v1098_v46, %s1409_s28 }
 0xc9f   :  { %v1103_v0 = vpop.permute.xlu0 %1102 }
 0xca0   :  { %v1105_v49 = vsel %vm361_vm9, -1e+30, %v1103_v0  ;;  %vm1157_vm9 = vcmask 785408  }
 0xca1   :  { %v1107_v9 = vsel %vm1106_vm0, %v1105_v49, -inf }
 0xca2   :  { %1108 = vmax.xlane.f32.xlu1 %v1107_v9 }
 0xcb3   :  { %1125 = vrot.lane.b32.xlu1 %v1650_v33, %s1403_s24 }
 0xcb7   :  { %1132 = vrot.lane.b32.xlu1 %v820_v32, %s1406_s14 }
 0xcbb   :  { %1136 = vrot.lane.b32.xlu1 %v1105_v49, %s1406_s14 }
 0xd2b   :  { %v1109_v56 = vpop.xlane.xlu1 %1108 }
 0xd2c   :  { %v1110_v34 = vsub.f32 %v1105_v49, %v1109_v56 }
 0xd2e   :  { %v1111_v51 = vmul.f32 1.442695, %v1110_v34 }
 0xd2f   :  { %v1126_v1 = vpop.permute.xlu1 %1125 }
 0xd30   :  { %1396 = vpow2.f32 %v1111_v51  ;;  %v1144_v41 = vsel %vm626_vm12, %v1143_v4, %v1126_v1 }
 0xd33   :  { %v1133_v21 = vpop.permute.xlu1 %1132 }
 0xd37   :  { %v1137_v11 = vpop.permute.xlu1 %1136 }
 0xd3d   :  { %v1397_v53 = vpop.eup %1396 }
 0xd3e   :  { %1114 = vrot.lane.b32.xlu0 %v1397_v53, %s1408_s25 }
 0xdb0   :  { %v1115_v54 = vpop.permute.xlu0 %1114 }
 0xdb1   :  { %v1118_v23 = vsel %vm1117_vm2, %v1115_v54, 0.0 }
 0xdb2   :  { %1119 = vadd.xlane.f32.xlu0 %v1118_v23 }
 0xdc8   :  { %1129 = vrot.lane.b32.xlu0 %v1826_v31, %s1403_s24 }
 0xe3b   :  { %v1120_v57 = vpop.xlane.xlu0 %1119 }
 0xe3c   :  { %1398 = vrcp.f32 %v1120_v57 }
 0xe3f   :  { %v1130_v2 = vpop.permute.xlu0 %1129 }
 0xe40   :  { %v1146_v5 = vsel %vm1145_vm3, %v1144_v41, %v1130_v2 }
 0xe41   :  { %v1148_v6 = vsel %vm1147_vm4, %v1146_v5, 0.0 }
 0xe42   :  { %v1150_v7 = vsel %vm1149_vm5, %v1148_v6, %v1133_v21 }
 0xe43   :  { %v1152_v8 = vsel %vm1151_vm6, %v1150_v7, 0.0 }
 0xe44   :  { %v1154_v12 = vsel %vm1153_vm7, %v1152_v8, %v1137_v11 }
 0xe45   :  { %v1156_v14 = vsel %vm1155_vm8, %v1154_v12, 0.0 }
 0xe49   :  { %v1399_v33 = vpop.eup %1398 }
 0xe4a   :  { %v1122_v48 = vmul.f32 %v1399_v33, %v1397_v53 }
 0xe4c   :  { %1140 = vrot.lane.b32.xlu0 %v1122_v48, %s1409_s28 }
 0xebe   :  { %v1141_v13 = vpop.permute.xlu0 %1140 }
 0xebf   :  { %v1158_v35 = vsel %vm1157_vm9, %v1156_v14, %v1141_v13 }
 0xec0   :  { %v1160_v45 = vsel %vm1159_vm10, %v1158_v35, 0.0 }
 0xec1   :  { %v1162_v30 = vsel %vm1161_vm11, %v1160_v45, 0.0 }
 0xec2   :  { %1163 = vst [vmem:[%s1884_s3] sm:$0xff] %v1162_v30 }

</bundles_post_ra>
